<compile_context>
chip_gen: v5e
topology: v5e:2x2
jax: 0.10.0
libtpu: 0.0.40
codegen_flags: <defaults>
</compile_context>

<pallas_src>
import jax
import jax.numpy as jnp
from jax.experimental import pallas as pl
from jax.experimental.pallas import tpu as pltpu


def _round_up(n: int, m: int) -> int:
    return ((n + m - 1) // m) * m


def _ceil_div(a: int, b: int) -> int:
    return -(-a // b)


def mlp_kernel(x_ref, w1_ref, b1_ref, w2_ref, b2_ref, o_ref):
    # fc1: bf16 operands on the MXU, f32 accumulation.
    h = jnp.dot(x_ref[...], w1_ref[...], preferred_element_type=jnp.float32)
    # Bias + ReLU in f32 on the VPU (safe on v5e: no bf16 VPU there).
    h = jnp.maximum(h + b1_ref[...], 0.0)
    # fc2: cast the activation back to the weight dtype (bf16) for the MXU.
    y = jnp.dot(h.astype(w2_ref.dtype), w2_ref[...],
                preferred_element_type=jnp.float32)
    # Output last dim is the true O (full-extent BlockSpec) -> masked store on
    # O lanes; ~8x fewer writeback bytes than padding O to 128 then slicing.
    o_ref[...] = (y + b2_ref[...]).astype(o_ref.dtype)


def prepare_params(w1, b1, w2, b2, *, mxu_dtype=jnp.bfloat16):
    """One-time parameter prep (hoisted out of the per-call wrapper).

    Weights are stored [in, out] (transposed vs. PyTorch) and cast to bf16 for
    the MXU; biases stay f32 with a leading broadcast axis. No feature-dim
    padding is needed because full-extent BlockSpec dims are legal.
    """
    w1p = w1.astype(mxu_dtype)
    w2p = w2.astype(mxu_dtype)
    b1p = jnp.reshape(b1, (1, -1)).astype(jnp.float32)
    b2p = jnp.reshape(b2, (1, -1)).astype(jnp.float32)
    return w1p, b1p, w2p, b2p


def basic_model_forward(x, params, *, block_b: int = 1024):
    """relu(x @ w1 + b1) @ w2 + b2, fused in one Pallas TPU kernel."""
    w1, b1, w2, b2 = params
    B, I = x.shape
    H = w1.shape[1]
    O = w2.shape[1]
    out_dtype = jnp.float32

    # Per-call operand prep: only x is touched (single cast to the MXU dtype).
    xk = x.astype(w1.dtype)

    # Advisory cost estimate so XLA schedules around the custom call sensibly.
    cost = pl.CostEstimate(
        flops=2 * B * I * H + 2 * B * H * O,
        transcendentals=0,
        bytes_accessed=(B * I + I * H + H * O) * 2 + (H + O + B * O) * 4,
    )

    if B <= block_b:
        # Small-batch path: one invocation, everything fully VMEM-resident,
        # no grid, no padding, no output slice.
        return pl.pallas_call(
            mlp_kernel,
            out_shape=jax.ShapeDtypeStruct((B, O), out_dtype),
            in_specs=[pl.BlockSpec(memory_space=pltpu.MemorySpace.VMEM)] * 5,
            out_specs=pl.BlockSpec(memory_space=pltpu.MemorySpace.VMEM),
            cost_estimate=cost,
        )(xk, w1, b1, w2, b2)

    # Batch-tiled path: tile the batch dim, keep weights/biases resident.
    # Round the tile count up to an even number (>1) so v7x's two TensorCores
    # get a balanced split; a no-op cost on v5e/v6e (single TC).
    n_tiles = _ceil_div(B, block_b)
    if n_tiles > 1 and n_tiles % 2 == 1:
        n_tiles += 1
    tb = _round_up(_ceil_div(B, n_tiles), 8)   # sublane-aligned batch tile
    Bp = tb * n_tiles

    # Only the batch dim is padded; I stays at its true extent (full-extent
    # last dim in the BlockSpec) so the dominant x HBM stream carries no
    # padded bytes. Padded rows produce garbage that is sliced away below.
    xp = jnp.pad(xk, ((0, Bp - B), (0, 0)))

    out = pl.pallas_call(
        mlp_kernel,
        out_shape=jax.ShapeDtypeStruct((Bp, O), out_dtype),
        grid=(n_tiles,),
        in_specs=[
            pl.BlockSpec((tb, I), lambda i: (i, 0)),   # x: batch-tiled
            pl.BlockSpec((I, H), lambda i: (0, 0)),    # W1 resident
            pl.BlockSpec((1, H), lambda i: (0, 0)),    # b1 resident
            pl.BlockSpec((H, O), lambda i: (0, 0)),    # W2 resident
            pl.BlockSpec((1, O), lambda i: (0, 0)),    # b2 resident
        ],
        out_specs=pl.BlockSpec((tb, O), lambda i: (i, 0)),
        compiler_params=pltpu.CompilerParams(
            # Independent batch tiles -> megacore sharding on v7x.
            dimension_semantics=("parallel",),
        ),
        cost_estimate=cost,
    )(xp, w1, b1, w2, b2)
    # TODO(synk): if H/O ever scale up, single-buffer the resident weight specs
    # (pipeline_mode=pl.Buffered(1)) and re-derive VMEM vs v7x's 64 MiB.
    return out[:B]


def init_linear_params(key, in_features, out_features, dtype=jnp.float32):
    """Deterministic init mimicking PyTorch nn.Linear (uniform ±1/sqrt(in))."""
    kw, kb = jax.random.split(key)
    bound = 1.0 / float(in_features) ** 0.5
    # Stored as [in, out] (transposed vs. PyTorch's [out, in]) for direct x @ W.
    w = jax.random.uniform(kw, (in_features, out_features), dtype,
                           minval=-bound, maxval=bound)
    b = jax.random.uniform(kb, (1, out_features), dtype,
                           minval=-bound, maxval=bound)
    return w, b


if __name__ == "__main__":
    # Small shapes implied by the module: Linear(input) -> ReLU -> Linear(output)
    batch, input_size, hidden_size, output_size = 8, 32, 64, 16

    key = jax.random.PRNGKey(0)
    kx, k1, k2, kx2 = jax.random.split(key, 4)

    x = jax.random.normal(kx, (batch, input_size), jnp.float32)
    w1, b1 = init_linear_params(k1, input_size, hidden_size)
    w2, b2 = init_linear_params(k2, hidden_size, output_size)

    # One-time parameter prep (bf16 cast, bias reshape) hoisted out of the
    # per-call path.
    params = prepare_params(w1, b1, w2, b2)
    fwd = jax.jit(lambda xx: basic_model_forward(xx, params))

    # f32 reference (same math as the PyTorch forward). Tolerance loosened for
    # the bf16 MXU operands (f32 accumulation keeps errors small).
    def ref_fn(xx):
        return jnp.maximum(xx @ w1 + b1, 0.0) @ w2 + b2

    # Small-batch (single-invocation) path.
    out = jax.block_until_ready(fwd(x))
    assert out.shape == (batch, output_size)
    assert jnp.allclose(out, ref_fn(x), atol=5e-2, rtol=5e-2)

    # Batch-tiled path (exercises batch padding + even v7x grid split).
    big_batch = 2500
    xb = jax.random.normal(kx2, (big_batch, input_size), jnp.float32)
    out_b = jax.block_until_ready(fwd(xb))
    assert out_b.shape == (big_batch, output_size)
    assert jnp.allclose(out_b, ref_fn(xb), atol=5e-2, rtol=5e-2)

    print("KERNEL_OK")
</pallas_src>

<mosaic_0001>
module attributes {stable_mosaic.version = 11 : i64} {
  func.func @mlp_kernel(%arg0: memref<8x32xbf16, #tpu.memory_space<vmem>>, %arg1: memref<32x64xbf16, #tpu.memory_space<vmem>>, %arg2: memref<1x64xf32, #tpu.memory_space<vmem>>, %arg3: memref<64x16xbf16, #tpu.memory_space<vmem>>, %arg4: memref<1x16xf32, #tpu.memory_space<vmem>>, %arg5: memref<8x16xf32, #tpu.memory_space<vmem>>) attributes {dimension_semantics = [], scalar_prefetch = 0 : i64, scratch_operands = 0 : i64, tpu.core_type = #tpu.core_type<tc>} {
    %c0 = arith.constant 0 : index
    %c0_0 = arith.constant 0 : index
    %0 = vector.load %arg0[%c0, %c0_0] : memref<8x32xbf16, #tpu.memory_space<vmem>>, vector<8x32xbf16>
    %c0_1 = arith.constant 0 : index
    %c0_2 = arith.constant 0 : index
    %1 = vector.load %arg1[%c0_1, %c0_2] : memref<32x64xbf16, #tpu.memory_space<vmem>>, vector<32x64xbf16>
    %cst = arith.constant dense<0.000000e+00> : vector<8x64xf32>
    %2 = tpu.matmul %0, %1, %cst {dimension_numbers = #tpu.dot_dimension_numbers<[1], [0], [0], [1], [0, 0, 1, 1], [], []>} : vector<8x32xbf16>, vector<32x64xbf16>, vector<8x64xf32> -> vector<8x64xf32>
    %c0_3 = arith.constant 0 : index
    %c0_4 = arith.constant 0 : index
    %3 = vector.load %arg2[%c0_3, %c0_4] : memref<1x64xf32, #tpu.memory_space<vmem>>, vector<1x64xf32>
    %4 = vector.broadcast %3 : vector<1x64xf32> to vector<8x64xf32>
    %5 = arith.addf %2, %4 : vector<8x64xf32>
    %cst_5 = arith.constant 0.000000e+00 : f32
    %6 = vector.broadcast %cst_5 : f32 to vector<8x64xf32>
    %7 = arith.maximumf %5, %6 : vector<8x64xf32>
    %8 = arith.truncf %7 : vector<8x64xf32> to vector<8x64xbf16>
    %c0_6 = arith.constant 0 : index
    %c0_7 = arith.constant 0 : index
    %9 = vector.load %arg3[%c0_6, %c0_7] : memref<64x16xbf16, #tpu.memory_space<vmem>>, vector<64x16xbf16>
    %cst_8 = arith.constant dense<0.000000e+00> : vector<8x16xf32>
    %10 = tpu.matmul %8, %9, %cst_8 {dimension_numbers = #tpu.dot_dimension_numbers<[1], [0], [0], [1], [0, 0, 1, 1], [], []>} : vector<8x64xbf16>, vector<64x16xbf16>, vector<8x16xf32> -> vector<8x16xf32>
    %c0_9 = arith.constant 0 : index
    %c0_10 = arith.constant 0 : index
    %11 = vector.load %arg4[%c0_9, %c0_10] : memref<1x16xf32, #tpu.memory_space<vmem>>, vector<1x16xf32>
    %12 = vector.broadcast %11 : vector<1x16xf32> to vector<8x16xf32>
    %13 = arith.addf %10, %12 : vector<8x16xf32>
    %c0_11 = arith.constant 0 : index
    %c0_12 = arith.constant 0 : index
    %14 = vector.load %arg5[%c0_11, %c0_12] : memref<8x16xf32, #tpu.memory_space<vmem>>, vector<8x16xf32>
    tpu.vector_store %arg5[%c0_11, %c0_12], %13 {strides = array<i32>} : memref<8x16xf32, #tpu.memory_space<vmem>>, vector<8x16xf32>,
    return
  }
}

</mosaic_0001>

<bundles_post_ra>
// kernel: _lambda_.1
= control target key start
LH: loop header
LB: loop body
LE: loop exit
PB: predicated region body
PF: predicated region fallthrough
CT: control target
= control target key end

     0   :  { %10 = vsyncpa [#allocation3], 0  ;;  %s337_s0 = inlined_call_operand.vmem [shape: bf16[8,32], index: 0, kind: input, shape index: {}]   ;;  %s338_s1 = inlined_call_operand.hbm [shape: bf16[32,64], index: 1, kind: input, shape index: {}]   ;;  %s339_s2 = inlined_call_operand.vmem [shape: f32[1,64], index: 2, kind: input, shape index: {}]   ;;  %s340_s3 = inlined_call_operand.hbm [shape: bf16[64,16], index: 3, kind: input, shape index: {}]   ;;  %s341_s4 = inlined_call_operand.vmem [shape: f32[1,16], index: 4, kind: input, shape index: {}]   ;;  %s342_s5 = inlined_call_operand.hbm [shape: f32[8,16], index: 5, kind: output, shape index: {}]  }
   0x1   :  { %11 = vsyncpa [#allocation6], 0 }
   0x2   :  { %12 = vsyncpa [#allocation4], 0  ;;  %s19_s20 = sshll.u32 %s338_s1, 4  ;;  %s284_s21 = smov [#allocation2]   ;;  %s20_s20 = int_to_ptr.hbm [resolvable:$true] %s19_s20 }
   0x3   :  { %s21_s22 = sshll.u32 %s284_s21, 4  ;;  %s34_s25 = sshll.u32 %s340_s3, 4  ;;  %s22_s22 = int_to_ptr.vmem [resolvable:$true] %s21_s22  ;;  %s35_s25 = int_to_ptr.hbm [resolvable:$true] %s34_s25 }
   0x4   :  { %s285_s26 = smov 64   ;;  %s286_s27 = smov 4  }
   0x5   :  { %27 = dma.hbm_to_vmem [thread:$0]  %s20_s20, 256, %s22_s22, [#allocation3], %s285_s26, %s285_s26, %s286_s27  }
   0x6   :  { %s287_s28 = smov [#allocation5]  }
   0x7   :  { %s36_s29 = sshll.u32 %s287_s28, 4  ;;  %s37_s29 = int_to_ptr.vmem [resolvable:$true] %s36_s29 }
   0x8   :  { %42 = dma.hbm_to_vmem [thread:$0]  %s35_s25, 512, %s37_s29, [#allocation6], %s285_s26, %s285_s26, %s286_s27  }
   0x9   :  { %278 = dma.done.wait [#allocation3], 256  }
   0xa   :  { %279 = vsyncadd [#allocation3], 4294967040 }
   0xb   :  { %280 = dma.done.wait [#allocation6], 512  }
   0xc   :  { %281 = vsyncadd [#allocation6], 4294966784  ;;  %v194_v0 = vld [vmem:[#allocation2 + $0x8] sm:$0xff]  ;;  %v193_v2 = vld [vmem:[#allocation2] sm:$0xff]  ;;  %vm75_vm0 = vcmask 261120   ;;  %vm130_vm1 = vcmask 523264  }
   0xd   :  { %v198_v1 = vld [vmem:[#allocation5 + $0x18] sm:$0xff]  ;;  %85 = vmatpush.bf16.msra.mxu0 %v194_v0  ;;  %v197_v3 = vld [vmem:[#allocation5 + $0x10] sm:$0xff]  ;;  %v196_v5 = vld [vmem:[#allocation5 + $0x8] sm:$0xff]  ;;  %s288_s8 = smov [#allocation7]   ;;  %s156_s12 = sshll.u32 %s342_s5, 4  ;;  %vm147_vm2 = vcmask 130048   ;;  %s157_s12 = int_to_ptr.hbm [resolvable:$true] %s156_s12 }
   0xe   :  { %138 = vmatpush.bf16.msra.mxu1 %v198_v1  ;;  %v54_v4 = vld [vmem:[%s337_s0] sm:$0xf]  ;;  %v195_v6 = vld [vmem:[#allocation5] sm:$0xff]  ;;  %s154_s9 = sshll.u32 %s288_s8, 4  ;;  %s155_s9 = int_to_ptr.vmem [resolvable:$true] %s154_s9 }
   0xf   :  { %v204_v7 = vld [vmem:[%s339_s2] ss:$0 sm:$0xff] }
  0x10   :  { %v205_v13 = vld [vmem:[%s341_s4] ss:$0 sm:$0xff] }
  0x11   :  { %86 = vmatpush.bf16.msra.mxu0 %v193_v2 }
  0x12   :  { %139 = vmatpush.bf16.msra.mxu1 %v197_v3 }
  0x14   :  { %175 = vmatmul.msk.bf16.vlgmr.msra.gmra.mxu0 %vm75_vm0, %v54_v4 }
  0x16   :  { %140 = vmatpush.bf16.msra.mxu1 %v196_v5 }
  0x1a   :  { %141 = vmatpush.bf16.msra.mxu1 %v195_v6 }
  0x91   :  { %v88_v8 = vpop.f32.mrf.mxu0 }
  0x92   :  { %v89_v9 = vadd.f32 %v204_v7, %v88_v8 }
  0x94   :  { %v92_v10 = vmax.f32 %v89_v9, 0.0 }
  0x96   :  { %v93_v11 = vpack.c.bf16 %v92_v10, %v92_v10 }
  0x98   :  { %192 = vmatmul.msk.bf16.vlgmr.msra.gmra.mxu1 %vm130_vm1, %v93_v11 }
  0x99   :  { %v90_v12 = vpop.f32.mrf.mxu0 }
 0x115   :  { %v143_v14 = vpop.f32.mrf.mxu1 }
 0x116   :  { %v144_v15 = vadd.f32 %v205_v13, %v143_v14 }
 0x118   :  { %148 = vst.msk [vmem:[#allocation7] sm:$0xff] %vm147_vm2, %v144_v15 }
 0x119   :  { %159 = dma.vmem_to_hbm [thread:$0]  %s155_s9, 128, %s157_s12, [#allocation4]  }
 0x11d   :  { %v145_v16 = vpop.f32.mrf.mxu1 }
 0x11e   :  { %282 = dma.done.wait [#allocation4], 128  }
 0x11f   :  { %283 = vsyncadd [#allocation4], 4294967168 }
 0x120   :  { %164 = vsyncpa [#allocation3], 1 }
 0x121   :  { %165 = vsyncpa [#allocation6], 1 }
 0x122   :  { %166 = vsyncpa [#allocation4], 1 }

</bundles_post_ra>
